<compile_context>
chip_gen: v6e
topology: v6e:2x2x1
jax: 0.10.0
libtpu: 0.0.40
codegen_flags: <defaults>
</compile_context>

<pallas_src>
import numpy as np
import jax
import jax.numpy as jnp
from jax.experimental import pallas as pl
from jax.experimental.pallas import tpu as pltpu


def _encoder_kernel(vid_ref, src_ref, off_ref,          # scalar-prefetch SMEM refs, (N_pad,) int32
                    feats_hbm, len_ref,                 # feats (V,T,D) left in HBM; lengths (B,1) i32
                    event_ref, clip_ref,                # outputs: (B, D), (B, L, D)
                    win_ref, sem_ref):                  # scratch: (B, 2*L_pad, D) VMEM, DMA sems (B,)
    B, two_lpad, D = win_ref.shape
    L_pad = two_lpad // 2
    L = clip_ref.shape[1]
    T = feats_hbm.shape[1]
    W = min(L_pad, T)                                   # static per-event DMA window height
    base = pl.program_id(0) * B

    # One window DMA per event; issue all B first so the copies overlap, then wait.
    copies = []
    for b in range(B):
        i = base + b
        cp = pltpu.make_async_copy(
            feats_hbm.at[vid_ref[i], pl.ds(src_ref[i], W), :],
            win_ref.at[b, pl.ds(0, W), :],
            sem_ref.at[b])
        cp.start()
        copies.append(cp)
    for cp in copies:
        cp.wait()

    # Gather each event's segment rows.  `off` is the residual in-window offset; it is 0 unless
    # the segment sits within L_pad rows of the end of its video (DMA start was clamped on host).
    win_all = jnp.stack(
        [win_ref[b, pl.ds(off_ref[base + b], L_pad), :] for b in range(B)], axis=0)  # (B,L_pad,D)

    lengths = len_ref[...]                                                   # (B, 1) int32
    valid = (jax.lax.broadcasted_iota(jnp.int32, (B, L_pad, 1), 1)
             < lengths[:, :, None])                                          # (B, L_pad, 1)
    # Select (not multiply) so stale/extra window rows are safely zeroed.
    clip_all = jnp.where(valid, win_all, jnp.zeros_like(win_all))
    clip_ref[...] = clip_all[:, :L, :].astype(clip_ref.dtype)

    # All B masked segment sums in a single MXU dot: block-diagonal ones (B, B*L_pad) x
    # stacked masked clips (B*L_pad, D).  Mosaic keeps f32 matmuls at full precision.
    flat = clip_all.astype(jnp.float32).reshape(B * L_pad, D)
    row = jax.lax.broadcasted_iota(jnp.int32, (B, B * L_pad), 0)
    col = jax.lax.broadcasted_iota(jnp.int32, (B, B * L_pad), 1)
    ones_bd = jnp.where((col >= row * L_pad) & (col < (row + 1) * L_pad),
                        jnp.float32(1.0), jnp.float32(0.0))
    seg_sum = jnp.dot(ones_bd, flat, preferred_element_type=jnp.float32)     # (B, D)
    denom = lengths.astype(jnp.float32) + 1e-5
    event_ref[...] = (seg_sum / denom).astype(event_ref.dtype)


def basic_encoder_forward(feats, vid_idx, featstamps):
    """feats: (V, T, D); vid_idx: list[int] length N; featstamps: list[(start, end)] inclusive."""
    V, T, D = feats.shape
    N = len(featstamps)
    dtype = feats.dtype
    itemsize = jnp.dtype(dtype).itemsize

    starts_np = np.array([s for (s, _) in featstamps], dtype=np.int32)
    ends_np = np.array([e for (_, e) in featstamps], dtype=np.int32)
    lengths_np = (ends_np - starts_np + 1).astype(np.int32)
    L = int(lengths_np.max())                           # max_att_len (PyTorch semantics)

    sub = {4: 8, 2: 16, 1: 32}.get(itemsize, 8)         # dtype-native sublane multiple
    L_pad = -(-L // sub) * sub                          # aligned window / clip tile height
    W = min(L_pad, T)                                   # static DMA window height

    # Events per grid step: multiple of 8 (sublane-dense event writeback), capped at 32 and
    # sized against a small VMEM budget so scratch + double-buffered outputs fit every
    # generation (v7x only has 64 MiB VMEM / 32 MiB scoped by default).
    per_event = (2 * L_pad + 2 * (L + 1)) * D * itemsize
    B = int(min(32, max(8, ((8 << 20) // max(per_event, 1)) // 8 * 8)))
    B = min(B, -(-N // 8) * 8)                          # don't batch far past N
    N_pad = -(-N // B) * B

    def _pad(a):
        return np.pad(a, (0, N_pad - N)) if N_pad > N else a

    vid_np = np.asarray(vid_idx, dtype=np.int32)
    src_np = np.minimum(starts_np, np.int32(T - W)).astype(np.int32)   # clamped DMA start
    off_np = (starts_np - src_np).astype(np.int32)                     # residual in-window offset

    vid = jnp.asarray(_pad(vid_np))
    src = jnp.asarray(_pad(src_np))
    off = jnp.asarray(_pad(off_np))
    len2d = jnp.asarray(_pad(lengths_np)).reshape(N_pad, 1)

    grid_spec = pltpu.PrefetchScalarGridSpec(
        num_scalar_prefetch=3,
        grid=(N_pad // B,),
        in_specs=[
            pl.BlockSpec(memory_space=pl.ANY),                                 # feats stay in HBM
            pl.BlockSpec((B, 1), lambda blk, vid, src, off: (blk, 0)),         # per-event lengths
        ],
        out_specs=[
            pl.BlockSpec((B, D), lambda blk, vid, src, off: (blk, 0)),         # event_feats
            pl.BlockSpec((B, L, D), lambda blk, vid, src, off: (blk, 0, 0)),   # clip_feats (exact L)
        ],
        scratch_shapes=[
            pltpu.VMEM((B, 2 * L_pad, D), dtype),
            pltpu.SemaphoreType.DMA((B,)),
        ],
    )

    event_pad, clip_pad = pl.pallas_call(
        _encoder_kernel,
        grid_spec=grid_spec,
        out_shape=(
            jax.ShapeDtypeStruct((N_pad, D), dtype),
            jax.ShapeDtypeStruct((N_pad, L, D), dtype),
        ),
        compiler_params=pltpu.CompilerParams(
            dimension_semantics=("parallel",)),
    )(vid, src, off, feats, len2d)

    event_feats = event_pad[:N]
    clip_feats = clip_pad[:N]
    # The mask depends only on lengths: compute it lane-dense in plain JAX (no kernel store).
    lengths = jnp.asarray(lengths_np)
    clip_mask = (jnp.arange(L, dtype=jnp.int32)[None, :] < lengths[:, None]).astype(dtype)
    return event_feats, clip_feats, clip_mask


def _reference(feats_np, vid_idx, featstamps, L):
    N = len(featstamps)
    D = feats_np.shape[-1]
    clip = np.zeros((N, L, D), np.float32)
    mask = np.zeros((N, L), np.float32)
    for i, (s, e) in enumerate(featstamps):
        seg = feats_np[vid_idx[i]][s:e + 1]
        clip[i, :len(seg)] = seg
        mask[i, :len(seg)] = 1.0
    event = (clip * mask[:, :, None]).sum(1) / (mask.sum(1, keepdims=True) + 1e-5)
    return event, clip, mask


if __name__ == "__main__":
    key = jax.random.PRNGKey(0)
    V, T, D = 3, 24, 128                               # num_videos, timesteps, feature_dim
    feats = jax.random.normal(key, (V, T, D), dtype=jnp.float32)

    vid_idx = [0, 1, 2, 1, 0]                          # one video index per event
    featstamps = [(0, 5), (2, 9), (18, 23), (4, 4), (10, 17)]   # inclusive (start, end)
    # exercises: tail-clamped window with off>0 (18,23), length-1 (4,4), full-width segment
    # (10,17), and padding of N=5 events up to the batch of 8.

    event_feats, clip_feats, clip_mask = basic_encoder_forward(feats, vid_idx, featstamps)
    jax.block_until_ready((event_feats, clip_feats, clip_mask))

    L = max(e - s + 1 for (s, e) in featstamps)
    ev_ref, clip_ref, mask_ref = _reference(np.asarray(feats), vid_idx, featstamps, L)

    assert np.allclose(np.asarray(event_feats), ev_ref, rtol=1e-5, atol=1e-5)
    assert np.allclose(np.asarray(clip_feats), clip_ref, rtol=1e-5, atol=1e-5)
    assert np.allclose(np.asarray(clip_mask), mask_ref, rtol=1e-5, atol=1e-5)

    print("KERNEL_OK")
</pallas_src>

<mosaic_0001>
module attributes {stable_mosaic.version = 11 : i64} {
  func.func @_encoder_kernel(%arg0: i32, %arg1: memref<8xi32, #tpu.memory_space<smem>>, %arg2: memref<8xi32, #tpu.memory_space<smem>>, %arg3: memref<8xi32, #tpu.memory_space<smem>>, %arg4: memref<3x24x128xf32, #tpu.memory_space<any>>, %arg5: memref<8x1xi32, #tpu.memory_space<vmem>>, %arg6: memref<8x128xf32, #tpu.memory_space<vmem>>, %arg7: memref<8x8x128xf32, #tpu.memory_space<vmem>>, %arg8: memref<8x16x128xf32, #tpu.memory_space<vmem>>, %arg9: memref<8x!tpu.dma_semaphore, #tpu.memory_space<semaphore_mem>>) attributes {dimension_semantics = [#tpu.dimension_semantics<parallel>], iteration_bounds = array<i64: 1>, scalar_prefetch = 3 : i64, scratch_operands = 2 : i64, tpu.core_type = #tpu.core_type<tc>, window_params = [{}, {transform_indices = @transform_1, window_bounds = array<i64: 8, 1>}, {transform_indices = @transform_2, window_bounds = array<i64: 8, 128>}, {transform_indices = @transform_3, window_bounds = array<i64: 8, 8, 128>}]} {
    %c8_i32 = arith.constant 8 : i32
    %0 = arith.muli %arg0, %c8_i32 : i32
    %c0_i32 = arith.constant 0 : i32
    %1 = arith.addi %0, %c0_i32 : i32
    %2 = arith.index_cast %1 : i32 to index
    %3 = memref.load %arg1[%2] : memref<8xi32, #tpu.memory_space<smem>>
    %4 = arith.index_cast %1 : i32 to index
    %5 = memref.load %arg2[%4] : memref<8xi32, #tpu.memory_space<smem>>
    %c0_i32_0 = arith.constant 0 : i32
    %c0_i32_1 = arith.constant 0 : i32
    %c0_i32_2 = arith.constant 0 : i32
    %6 = tpu.memref_slice %arg4[%3, %5, %c0_i32_2] : memref<3x24x128xf32, #tpu.memory_space<any>> -> memref<1x8x128xf32, #tpu.memory_space<any>>
    %7 = tpu.memref_squeeze %6 : memref<1x8x128xf32, #tpu.memory_space<any>> -> memref<8x128xf32, #tpu.memory_space<any>>
    %c0_i32_3 = arith.constant 0 : i32
    %c0_i32_4 = arith.constant 0 : i32
    %8 = tpu.memref_slice %arg8[%c0_i32_0, %c0_i32_3, %c0_i32_4] : memref<8x16x128xf32, #tpu.memory_space<vmem>> -> memref<1x8x128xf32, #tpu.memory_space<vmem>>
    %9 = tpu.memref_squeeze %8 : memref<1x8x128xf32, #tpu.memory_space<vmem>> -> memref<8x128xf32, #tpu.memory_space<vmem>>
    %10 = tpu.memref_slice %arg9[%c0_i32_1] : memref<8x!tpu.dma_semaphore, #tpu.memory_space<semaphore_mem>> -> memref<1x!tpu.dma_semaphore, #tpu.memory_space<semaphore_mem>>
    %11 = tpu.memref_squeeze %10 : memref<1x!tpu.dma_semaphore, #tpu.memory_space<semaphore_mem>> -> memref<!tpu.dma_semaphore, #tpu.memory_space<semaphore_mem>>
    tpu.enqueue_dma source(%7 : memref<8x128xf32, #tpu.memory_space<any>>) target(%9 : memref<8x128xf32, #tpu.memory_space<vmem>>) target_semaphore(%11 : memref<!tpu.dma_semaphore, #tpu.memory_space<semaphore_mem>>)
    %c1_i32 = arith.constant 1 : i32
    %12 = arith.addi %0, %c1_i32 : i32
    %13 = arith.index_cast %12 : i32 to index
    %14 = memref.load %arg1[%13] : memref<8xi32, #tpu.memory_space<smem>>
    %15 = arith.index_cast %12 : i32 to index
    %16 = memref.load %arg2[%15] : memref<8xi32, #tpu.memory_space<smem>>
    %c1_i32_5 = arith.constant 1 : i32
    %c1_i32_6 = arith.constant 1 : i32
    %c0_i32_7 = arith.constant 0 : i32
    %17 = tpu.memref_slice %arg4[%14, %16, %c0_i32_7] : memref<3x24x128xf32, #tpu.memory_space<any>> -> memref<1x8x128xf32, #tpu.memory_space<any>>
    %18 = tpu.memref_squeeze %17 : memref<1x8x128xf32, #tpu.memory_space<any>> -> memref<8x128xf32, #tpu.memory_space<any>>
    %c0_i32_8 = arith.constant 0 : i32
    %c0_i32_9 = arith.constant 0 : i32
    %19 = tpu.memref_slice %arg8[%c1_i32_5, %c0_i32_8, %c0_i32_9] : memref<8x16x128xf32, #tpu.memory_space<vmem>> -> memref<1x8x128xf32, #tpu.memory_space<vmem>>
    %20 = tpu.memref_squeeze %19 : memref<1x8x128xf32, #tpu.memory_space<vmem>> -> memref<8x128xf32, #tpu.memory_space<vmem>>
    %21 = tpu.memref_slice %arg9[%c1_i32_6] : memref<8x!tpu.dma_semaphore, #tpu.memory_space<semaphore_mem>> -> memref<1x!tpu.dma_semaphore, #tpu.memory_space<semaphore_mem>>
    %22 = tpu.memref_squeeze %21 : memref<1x!tpu.dma_semaphore, #tpu.memory_space<semaphore_mem>> -> memref<!tpu.dma_semaphore, #tpu.memory_space<semaphore_mem>>
    tpu.enqueue_dma source(%18 : memref<8x128xf32, #tpu.memory_space<any>>) target(%20 : memref<8x128xf32, #tpu.memory_space<vmem>>) target_semaphore(%22 : memref<!tpu.dma_semaphore, #tpu.memory_space<semaphore_mem>>)
    %c2_i32 = arith.constant 2 : i32
    %23 = arith.addi %0, %c2_i32 : i32
    %24 = arith.index_cast %23 : i32 to index
    %25 = memref.load %arg1[%24] : memref<8xi32, #tpu.memory_space<smem>>
    %26 = arith.index_cast %23 : i32 to index
    %27 = memref.load %arg2[%26] : memref<8xi32, #tpu.memory_space<smem>>
    %c2_i32_10 = arith.constant 2 : i32
    %c2_i32_11 = arith.constant 2 : i32
    %c0_i32_12 = arith.constant 0 : i32
    %28 = tpu.memref_slice %arg4[%25, %27, %c0_i32_12] : memref<3x24x128xf32, #tpu.memory_space<any>> -> memref<1x8x128xf32, #tpu.memory_space<any>>
    %29 = tpu.memref_squeeze %28 : memref<1x8x128xf32, #tpu.memory_space<any>> -> memref<8x128xf32, #tpu.memory_space<any>>
    %c0_i32_13 = arith.constant 0 : i32
    %c0_i32_14 = arith.constant 0 : i32
    %30 = tpu.memref_slice %arg8[%c2_i32_10, %c0_i32_13, %c0_i32_14] : memref<8x16x128xf32, #tpu.memory_space<vmem>> -> memref<1x8x128xf32, #tpu.memory_space<vmem>>
    %31 = tpu.memref_squeeze %30 : memref<1x8x128xf32, #tpu.memory_space<vmem>> -> memref<8x128xf32, #tpu.memory_space<vmem>>
    %32 = tpu.memref_slice %arg9[%c2_i32_11] : memref<8x!tpu.dma_semaphore, #tpu.memory_space<semaphore_mem>> -> memref<1x!tpu.dma_semaphore, #tpu.memory_space<semaphore_mem>>
    %33 = tpu.memref_squeeze %32 : memref<1x!tpu.dma_semaphore, #tpu.memory_space<semaphore_mem>> -> memref<!tpu.dma_semaphore, #tpu.memory_space<semaphore_mem>>
    tpu.enqueue_dma source(%29 : memref<8x128xf32, #tpu.memory_space<any>>) target(%31 : memref<8x128xf32, #tpu.memory_space<vmem>>) target_semaphore(%33 : memref<!tpu.dma_semaphore, #tpu.memory_space<semaphore_mem>>)
    %c3_i32 = arith.constant 3 : i32
    %34 = arith.addi %0, %c3_i32 : i32
    %35 = arith.index_cast %34 : i32 to index
    %36 = memref.load %arg1[%35] : memref<8xi32, #tpu.memory_space<smem>>
    %37 = arith.index_cast %34 : i32 to index
    %38 = memref.load %arg2[%37] : memref<8xi32, #tpu.memory_space<smem>>
    %c3_i32_15 = arith.constant 3 : i32
    %c3_i32_16 = arith.constant 3 : i32
    %c0_i32_17 = arith.constant 0 : i32
    %39 = tpu.memref_slice %arg4[%36, %38, %c0_i32_17] : memref<3x24x128xf32, #tpu.memory_space<any>> -> memref<1x8x128xf32, #tpu.memory_space<any>>
    %40 = tpu.memref_squeeze %39 : memref<1x8x128xf32, #tpu.memory_space<any>> -> memref<8x128xf32, #tpu.memory_space<any>>
    %c0_i32_18 = arith.constant 0 : i32
    %c0_i32_19 = arith.constant 0 : i32
    %41 = tpu.memref_slice %arg8[%c3_i32_15, %c0_i32_18, %c0_i32_19] : memref<8x16x128xf32, #tpu.memory_space<vmem>> -> memref<1x8x128xf32, #tpu.memory_space<vmem>>
    %42 = tpu.memref_squeeze %41 : memref<1x8x128xf32, #tpu.memory_space<vmem>> -> memref<8x128xf32, #tpu.memory_space<vmem>>
    %43 = tpu.memref_slice %arg9[%c3_i32_16] : memref<8x!tpu.dma_semaphore, #tpu.memory_space<semaphore_mem>> -> memref<1x!tpu.dma_semaphore, #tpu.memory_space<semaphore_mem>>
    %44 = tpu.memref_squeeze %43 : memref<1x!tpu.dma_semaphore, #tpu.memory_space<semaphore_mem>> -> memref<!tpu.dma_semaphore, #tpu.memory_space<semaphore_mem>>
    tpu.enqueue_dma source(%40 : memref<8x128xf32, #tpu.memory_space<any>>) target(%42 : memref<8x128xf32, #tpu.memory_space<vmem>>) target_semaphore(%44 : memref<!tpu.dma_semaphore, #tpu.memory_space<semaphore_mem>>)
    %c4_i32 = arith.constant 4 : i32
    %45 = arith.addi %0, %c4_i32 : i32
    %46 = arith.index_cast %45 : i32 to index
    %47 = memref.load %arg1[%46] : memref<8xi32, #tpu.memory_space<smem>>
    %48 = arith.index_cast %45 : i32 to index
    %49 = memref.load %arg2[%48] : memref<8xi32, #tpu.memory_space<smem>>
    %c4_i32_20 = arith.constant 4 : i32
    %c4_i32_21 = arith.constant 4 : i32
    %c0_i32_22 = arith.constant 0 : i32
    %50 = tpu.memref_slice %arg4[%47, %49, %c0_i32_22] : memref<3x24x128xf32, #tpu.memory_space<any>> -> memref<1x8x128xf32, #tpu.memory_space<any>>
    %51 = tpu.memref_squeeze %50 : memref<1x8x128xf32, #tpu.memory_space<any>> -> memref<8x128xf32, #tpu.memory_space<any>>
    %c0_i32_23 = arith.constant 0 : i32
    %c0_i32_24 = arith.constant 0 : i32
    %52 = tpu.memref_slice %arg8[%c4_i32_20, %c0_i32_23, %c0_i32_24] : memref<8x16x128xf32, #tpu.memory_space<vmem>> -> memref<1x8x128xf32, #tpu.memory_space<vmem>>
    %53 = tpu.memref_squeeze %52 : memref<1x8x128xf32, #tpu.memory_space<vmem>> -> memref<8x128xf32, #tpu.memory_space<vmem>>
    %54 = tpu.memref_slice %arg9[%c4_i32_21] : memref<8x!tpu.dma_semaphore, #tpu.memory_space<semaphore_mem>> -> memref<1x!tpu.dma_semaphore, #tpu.memory_space<semaphore_mem>>
    %55 = tpu.memref_squeeze %54 : memref<1x!tpu.dma_semaphore, #tpu.memory_space<semaphore_mem>> -> memref<!tpu.dma_semaphore, #tpu.memory_space<semaphore_mem>>
    tpu.enqueue_dma source(%51 : memref<8x128xf32, #tpu.memory_space<any>>) target(%53 : memref<8x128xf32, #tpu.memory_space<vmem>>) target_semaphore(%55 : memref<!tpu.dma_semaphore, #tpu.memory_space<semaphore_mem>>)
    %c5_i32 = arith.constant 5 : i32
    %56 = arith.addi %0, %c5_i32 : i32
    %57 = arith.index_cast %56 : i32 to index
    %58 = memref.load %arg1[%57] : memref<8xi32, #tpu.memory_space<smem>>
    %59 = arith.index_cast %56 : i32 to index
    %60 = memref.load %arg2[%59] : memref<8xi32, #tpu.memory_space<smem>>
    %c5_i32_25 = arith.constant 5 : i32
    %c5_i32_26 = arith.constant 5 : i32
    %c0_i32_27 = arith.constant 0 : i32
    %61 = tpu.memref_slice %arg4[%58, %60, %c0_i32_27] : memref<3x24x128xf32, #tpu.memory_space<any>> -> memref<1x8x128xf32, #tpu.memory_space<any>>
    %62 = tpu.memref_squeeze %61 : memref<1x8x128xf32, #tpu.memory_space<any>> -> memref<8x128xf32, #tpu.memory_space<any>>
    %c0_i32_28 = arith.constant 0 : i32
    %c0_i32_29 = arith.constant 0 : i32
    %63 = tpu.memref_slice %arg8[%c5_i32_25, %c0_i32_28, %c0_i32_29] : memref<8x16x128xf32, #tpu.memory_space<vmem>> -> memref<1x8x128xf32, #tpu.memory_space<vmem>>
    %64 = tpu.memref_squeeze %63 : memref<1x8x128xf32, #tpu.memory_space<vmem>> -> memref<8x128xf32, #tpu.memory_space<vmem>>
    %65 = tpu.memref_slice %arg9[%c5_i32_26] : memref<8x!tpu.dma_semaphore, #tpu.memory_space<semaphore_mem>> -> memref<1x!tpu.dma_semaphore, #tpu.memory_space<semaphore_mem>>
    %66 = tpu.memref_squeeze %65 : memref<1x!tpu.dma_semaphore, #tpu.memory_space<semaphore_mem>> -> memref<!tpu.dma_semaphore, #tpu.memory_space<semaphore_mem>>
    tpu.enqueue_dma source(%62 : memref<8x128xf32, #tpu.memory_space<any>>) target(%64 : memref<8x128xf32, #tpu.memory_space<vmem>>) target_semaphore(%66 : memref<!tpu.dma_semaphore, #tpu.memory_space<semaphore_mem>>)
    %c6_i32 = arith.constant 6 : i32
    %67 = arith.addi %0, %c6_i32 : i32
    %68 = arith.index_cast %67 : i32 to index
    %69 = memref.load %arg1[%68] : memref<8xi32, #tpu.memory_space<smem>>
    %70 = arith.index_cast %67 : i32 to index
    %71 = memref.load %arg2[%70] : memref<8xi32, #tpu.memory_space<smem>>
    %c6_i32_30 = arith.constant 6 : i32
    %c6_i32_31 = arith.constant 6 : i32
    %c0_i32_32 = arith.constant 0 : i32
    %72 = tpu.memref_slice %arg4[%69, %71, %c0_i32_32] : memref<3x24x128xf32, #tpu.memory_space<any>> -> memref<1x8x128xf32, #tpu.memory_space<any>>
    %73 = tpu.memref_squeeze %72 : memref<1x8x128xf32, #tpu.memory_space<any>> -> memref<8x128xf32, #tpu.memory_space<any>>
    %c0_i32_33 = arith.constant 0 : i32
    %c0_i32_34 = arith.constant 0 : i32
    %74 = tpu.memref_slice %arg8[%c6_i32_30, %c0_i32_33, %c0_i32_34] : memref<8x16x128xf32, #tpu.memory_space<vmem>> -> memref<1x8x128xf32, #tpu.memory_space<vmem>>
    %75 = tpu.memref_squeeze %74 : memref<1x8x128xf32, #tpu.memory_space<vmem>> -> memref<8x128xf32, #tpu.memory_space<vmem>>
    %76 = tpu.memref_slice %arg9[%c6_i32_31] : memref<8x!tpu.dma_semaphore, #tpu.memory_space<semaphore_mem>> -> memref<1x!tpu.dma_semaphore, #tpu.memory_space<semaphore_mem>>
    %77 = tpu.memref_squeeze %76 : memref<1x!tpu.dma_semaphore, #tpu.memory_space<semaphore_mem>> -> memref<!tpu.dma_semaphore, #tpu.memory_space<semaphore_mem>>
    tpu.enqueue_dma source(%73 : memref<8x128xf32, #tpu.memory_space<any>>) target(%75 : memref<8x128xf32, #tpu.memory_space<vmem>>) target_semaphore(%77 : memref<!tpu.dma_semaphore, #tpu.memory_space<semaphore_mem>>)
    %c7_i32 = arith.constant 7 : i32
    %78 = arith.addi %0, %c7_i32 : i32
    %79 = arith.index_cast %78 : i32 to index
    %80 = memref.load %arg1[%79] : memref<8xi32, #tpu.memory_space<smem>>
    %81 = arith.index_cast %78 : i32 to index
    %82 = memref.load %arg2[%81] : memref<8xi32, #tpu.memory_space<smem>>
    %c7_i32_35 = arith.constant 7 : i32
    %c7_i32_36 = arith.constant 7 : i32
    %c0_i32_37 = arith.constant 0 : i32
    %83 = tpu.memref_slice %arg4[%80, %82, %c0_i32_37] : memref<3x24x128xf32, #tpu.memory_space<any>> -> memref<1x8x128xf32, #tpu.memory_space<any>>
    %84 = tpu.memref_squeeze %83 : memref<1x8x128xf32, #tpu.memory_space<any>> -> memref<8x128xf32, #tpu.memory_space<any>>
    %c0_i32_38 = arith.constant 0 : i32
    %c0_i32_39 = arith.constant 0 : i32
    %85 = tpu.memref_slice %arg8[%c7_i32_35, %c0_i32_38, %c0_i32_39] : memref<8x16x128xf32, #tpu.memory_space<vmem>> -> memref<1x8x128xf32, #tpu.memory_space<vmem>>
    %86 = tpu.memref_squeeze %85 : memref<1x8x128xf32, #tpu.memory_space<vmem>> -> memref<8x128xf32, #tpu.memory_space<vmem>>
    %87 = tpu.memref_slice %arg9[%c7_i32_36] : memref<8x!tpu.dma_semaphore, #tpu.memory_space<semaphore_mem>> -> memref<1x!tpu.dma_semaphore, #tpu.memory_space<semaphore_mem>>
    %88 = tpu.memref_squeeze %87 : memref<1x!tpu.dma_semaphore, #tpu.memory_space<semaphore_mem>> -> memref<!tpu.dma_semaphore, #tpu.memory_space<semaphore_mem>>
    tpu.enqueue_dma source(%84 : memref<8x128xf32, #tpu.memory_space<any>>) target(%86 : memref<8x128xf32, #tpu.memory_space<vmem>>) target_semaphore(%88 : memref<!tpu.dma_semaphore, #tpu.memory_space<semaphore_mem>>)
    %c0_i32_40 = arith.constant 0 : i32
    %c0_i32_41 = arith.constant 0 : i32
    %c0_i32_42 = arith.constant 0 : i32
    %89 = tpu.memref_slice %arg4[%3, %5, %c0_i32_42] : memref<3x24x128xf32, #tpu.memory_space<any>> -> memref<1x8x128xf32, #tpu.memory_space<any>>
    %90 = tpu.memref_squeeze %89 : memref<1x8x128xf32, #tpu.memory_space<any>> -> memref<8x128xf32, #tpu.memory_space<any>>
    %c0_i32_43 = arith.constant 0 : i32
    %c0_i32_44 = arith.constant 0 : i32
    %91 = tpu.memref_slice %arg8[%c0_i32_40, %c0_i32_43, %c0_i32_44] : memref<8x16x128xf32, #tpu.memory_space<vmem>> -> memref<1x8x128xf32, #tpu.memory_space<vmem>>
    %92 = tpu.memref_squeeze %91 : memref<1x8x128xf32, #tpu.memory_space<vmem>> -> memref<8x128xf32, #tpu.memory_space<vmem>>
    %93 = tpu.memref_slice %arg9[%c0_i32_41] : memref<8x!tpu.dma_semaphore, #tpu.memory_space<semaphore_mem>> -> memref<1x!tpu.dma_semaphore, #tpu.memory_space<semaphore_mem>>
    %94 = tpu.memref_squeeze %93 : memref<1x!tpu.dma_semaphore, #tpu.memory_space<semaphore_mem>> -> memref<!tpu.dma_semaphore, #tpu.memory_space<semaphore_mem>>
    tpu.wait_dma2 semaphore(%94 : memref<!tpu.dma_semaphore, #tpu.memory_space<semaphore_mem>>) src(%90 : memref<8x128xf32, #tpu.memory_space<any>>) dst(%92 : memref<8x128xf32, #tpu.memory_space<vmem>>)
    %c1_i32_45 = arith.constant 1 : i32
    %c1_i32_46 = arith.constant 1 : i32
    %c0_i32_47 = arith.constant 0 : i32
    %95 = tpu.memref_slice %arg4[%14, %16, %c0_i32_47] : memref<3x24x128xf32, #tpu.memory_space<any>> -> memref<1x8x128xf32, #tpu.memory_space<any>>
    %96 = tpu.memref_squeeze %95 : memref<1x8x128xf32, #tpu.memory_space<any>> -> memref<8x128xf32, #tpu.memory_space<any>>
    %c0_i32_48 = arith.constant 0 : i32
    %c0_i32_49 = arith.constant 0 : i32
    %97 = tpu.memref_slice %arg8[%c1_i32_45, %c0_i32_48, %c0_i32_49] : memref<8x16x128xf32, #tpu.memory_space<vmem>> -> memref<1x8x128xf32, #tpu.memory_space<vmem>>
    %98 = tpu.memref_squeeze %97 : memref<1x8x128xf32, #tpu.memory_space<vmem>> -> memref<8x128xf32, #tpu.memory_space<vmem>>
    %99 = tpu.memref_slice %arg9[%c1_i32_46] : memref<8x!tpu.dma_semaphore, #tpu.memory_space<semaphore_mem>> -> memref<1x!tpu.dma_semaphore, #tpu.memory_space<semaphore_mem>>
    %100 = tpu.memref_squeeze %99 : memref<1x!tpu.dma_semaphore, #tpu.memory_space<semaphore_mem>> -> memref<!tpu.dma_semaphore, #tpu.memory_space<semaphore_mem>>
    tpu.wait_dma2 semaphore(%100 : memref<!tpu.dma_semaphore, #tpu.memory_space<semaphore_mem>>) src(%96 : memref<8x128xf32, #tpu.memory_space<any>>) dst(%98 : memref<8x128xf32, #tpu.memory_space<vmem>>)
    %c2_i32_50 = arith.constant 2 : i32
    %c2_i32_51 = arith.constant 2 : i32
    %c0_i32_52 = arith.constant 0 : i32
    %101 = tpu.memref_slice %arg4[%25, %27, %c0_i32_52] : memref<3x24x128xf32, #tpu.memory_space<any>> -> memref<1x8x128xf32, #tpu.memory_space<any>>
    %102 = tpu.memref_squeeze %101 : memref<1x8x128xf32, #tpu.memory_space<any>> -> memref<8x128xf32, #tpu.memory_space<any>>
    %c0_i32_53 = arith.constant 0 : i32
    %c0_i32_54 = arith.constant 0 : i32
    %103 = tpu.memref_slice %arg8[%c2_i32_50, %c0_i32_53, %c0_i32_54] : memref<8x16x128xf32, #tpu.memory_space<vmem>> -> memref<1x8x128xf32, #tpu.memory_space<vmem>>
    %104 = tpu.memref_squeeze %103 : memref<1x8x128xf32, #tpu.memory_space<vmem>> -> memref<8x128xf32, #tpu.memory_space<vmem>>
    %105 = tpu.memref_slice %arg9[%c2_i32_51] : memref<8x!tpu.dma_semaphore, #tpu.memory_space<semaphore_mem>> -> memref<1x!tpu.dma_semaphore, #tpu.memory_space<semaphore_mem>>
    %106 = tpu.memref_squeeze %105 : memref<1x!tpu.dma_semaphore, #tpu.memory_space<semaphore_mem>> -> memref<!tpu.dma_semaphore, #tpu.memory_space<semaphore_mem>>
    tpu.wait_dma2 semaphore(%106 : memref<!tpu.dma_semaphore, #tpu.memory_space<semaphore_mem>>) src(%102 : memref<8x128xf32, #tpu.memory_space<any>>) dst(%104 : memref<8x128xf32, #tpu.memory_space<vmem>>)
    %c3_i32_55 = arith.constant 3 : i32
    %c3_i32_56 = arith.constant 3 : i32
    %c0_i32_57 = arith.constant 0 : i32
    %107 = tpu.memref_slice %arg4[%36, %38, %c0_i32_57] : memref<3x24x128xf32, #tpu.memory_space<any>> -> memref<1x8x128xf32, #tpu.memory_space<any>>
    %108 = tpu.memref_squeeze %107 : memref<1x8x128xf32, #tpu.memory_space<any>> -> memref<8x128xf32, #tpu.memory_space<any>>
    %c0_i32_58 = arith.constant 0 : i32
    %c0_i32_59 = arith.constant 0 : i32
    %109 = tpu.memref_slice %arg8[%c3_i32_55, %c0_i32_58, %c0_i32_59] : memref<8x16x128xf32, #tpu.memory_space<vmem>> -> memref<1x8x128xf32, #tpu.memory_space<vmem>>
    %110 = tpu.memref_squeeze %109 : memref<1x8x128xf32, #tpu.memory_space<vmem>> -> memref<8x128xf32, #tpu.memory_space<vmem>>
    %111 = tpu.memref_slice %arg9[%c3_i32_56] : memref<8x!tpu.dma_semaphore, #tpu.memory_space<semaphore_mem>> -> memref<1x!tpu.dma_semaphore, #tpu.memory_space<semaphore_mem>>
    %112 = tpu.memref_squeeze %111 : memref<1x!tpu.dma_semaphore, #tpu.memory_space<semaphore_mem>> -> memref<!tpu.dma_semaphore, #tpu.memory_space<semaphore_mem>>
    tpu.wait_dma2 semaphore(%112 : memref<!tpu.dma_semaphore, #tpu.memory_space<semaphore_mem>>) src(%108 : memref<8x128xf32, #tpu.memory_space<any>>) dst(%110 : memref<8x128xf32, #tpu.memory_space<vmem>>)
    %c4_i32_60 = arith.constant 4 : i32
    %c4_i32_61 = arith.constant 4 : i32
    %c0_i32_62 = arith.constant 0 : i32
    %113 = tpu.memref_slice %arg4[%47, %49, %c0_i32_62] : memref<3x24x128xf32, #tpu.memory_space<any>> -> memref<1x8x128xf32, #tpu.memory_space<any>>
    %114 = tpu.memref_squeeze %113 : memref<1x8x128xf32, #tpu.memory_space<any>> -> memref<8x128xf32, #tpu.memory_space<any>>
    %c0_i32_63 = arith.constant 0 : i32
    %c0_i32_64 = arith.constant 0 : i32
    %115 = tpu.memref_slice %arg8[%c4_i32_60, %c0_i32_63, %c0_i32_64] : memref<8x16x128xf32, #tpu.memory_space<vmem>> -> memref<1x8x128xf32, #tpu.memory_space<vmem>>
    %116 = tpu.memref_squeeze %115 : memref<1x8x128xf32, #tpu.memory_space<vmem>> -> memref<8x128xf32, #tpu.memory_space<vmem>>
    %117 = tpu.memref_slice %arg9[%c4_i32_61] : memref<8x!tpu.dma_semaphore, #tpu.memory_space<semaphore_mem>> -> memref<1x!tpu.dma_semaphore, #tpu.memory_space<semaphore_mem>>
    %118 = tpu.memref_squeeze %117 : memref<1x!tpu.dma_semaphore, #tpu.memory_space<semaphore_mem>> -> memref<!tpu.dma_semaphore, #tpu.memory_space<semaphore_mem>>
    tpu.wait_dma2 semaphore(%118 : memref<!tpu.dma_semaphore, #tpu.memory_space<semaphore_mem>>) src(%114 : memref<8x128xf32, #tpu.memory_space<any>>) dst(%116 : memref<8x128xf32, #tpu.memory_space<vmem>>)
    %c5_i32_65 = arith.constant 5 : i32
    %c5_i32_66 = arith.constant 5 : i32
    %c0_i32_67 = arith.constant 0 : i32
    %119 = tpu.memref_slice %arg4[%58, %60, %c0_i32_67] : memref<3x24x128xf32, #tpu.memory_space<any>> -> memref<1x8x128xf32, #tpu.memory_space<any>>
    %120 = tpu.memref_squeeze %119 : memref<1x8x128xf32, #tpu.memory_space<any>> -> memref<8x128xf32, #tpu.memory_space<any>>
    %c0_i32_68 = arith.constant 0 : i32
    %c0_i32_69 = arith.constant 0 : i32
    %121 = tpu.memref_slice %arg8[%c5_i32_65, %c0_i32_68, %c0_i32_69] : memref<8x16x128xf32, #tpu.memory_space<vmem>> -> memref<1x8x128xf32, #tpu.memory_space<vmem>>
    %122 = tpu.memref_squeeze %121 : memref<1x8x128xf32, #tpu.memory_space<vmem>> -> memref<8x128xf32, #tpu.memory_space<vmem>>
    %123 = tpu.memref_slice %arg9[%c5_i32_66] : memref<8x!tpu.dma_semaphore, #tpu.memory_space<semaphore_mem>> -> memref<1x!tpu.dma_semaphore, #tpu.memory_space<semaphore_mem>>
    %124 = tpu.memref_squeeze %123 : memref<1x!tpu.dma_semaphore, #tpu.memory_space<semaphore_mem>> -> memref<!tpu.dma_semaphore, #tpu.memory_space<semaphore_mem>>
    tpu.wait_dma2 semaphore(%124 : memref<!tpu.dma_semaphore, #tpu.memory_space<semaphore_mem>>) src(%120 : memref<8x128xf32, #tpu.memory_space<any>>) dst(%122 : memref<8x128xf32, #tpu.memory_space<vmem>>)
    %c6_i32_70 = arith.constant 6 : i32
    %c6_i32_71 = arith.constant 6 : i32
    %c0_i32_72 = arith.constant 0 : i32
    %125 = tpu.memref_slice %arg4[%69, %71, %c0_i32_72] : memref<3x24x128xf32, #tpu.memory_space<any>> -> memref<1x8x128xf32, #tpu.memory_space<any>>
    %126 = tpu.memref_squeeze %125 : memref<1x8x128xf32, #tpu.memory_space<any>> -> memref<8x128xf32, #tpu.memory_space<any>>
    %c0_i32_73 = arith.constant 0 : i32
    %c0_i32_74 = arith.constant 0 : i32
    %127 = tpu.memref_slice %arg8[%c6_i32_70, %c0_i32_73, %c0_i32_74] : memref<8x16x128xf32, #tpu.memory_space<vmem>> -> memref<1x8x128xf32, #tpu.memory_space<vmem>>
    %128 = tpu.memref_squeeze %127 : memref<1x8x128xf32, #tpu.memory_space<vmem>> -> memref<8x128xf32, #tpu.memory_space<vmem>>
    %129 = tpu.memref_slice %arg9[%c6_i32_71] : memref<8x!tpu.dma_semaphore, #tpu.memory_space<semaphore_mem>> -> memref<1x!tpu.dma_semaphore, #tpu.memory_space<semaphore_mem>>
    %130 = tpu.memref_squeeze %129 : memref<1x!tpu.dma_semaphore, #tpu.memory_space<semaphore_mem>> -> memref<!tpu.dma_semaphore, #tpu.memory_space<semaphore_mem>>
    tpu.wait_dma2 semaphore(%130 : memref<!tpu.dma_semaphore, #tpu.memory_space<semaphore_mem>>) src(%126 : memref<8x128xf32, #tpu.memory_space<any>>) dst(%128 : memref<8x128xf32, #tpu.memory_space<vmem>>)
    %c7_i32_75 = arith.constant 7 : i32
    %c7_i32_76 = arith.constant 7 : i32
    %c0_i32_77 = arith.constant 0 : i32
    %131 = tpu.memref_slice %arg4[%80, %82, %c0_i32_77] : memref<3x24x128xf32, #tpu.memory_space<any>> -> memref<1x8x128xf32, #tpu.memory_space<any>>
    %132 = tpu.memref_squeeze %131 : memref<1x8x128xf32, #tpu.memory_space<any>> -> memref<8x128xf32, #tpu.memory_space<any>>
    %c0_i32_78 = arith.constant 0 : i32
    %c0_i32_79 = arith.constant 0 : i32
    %133 = tpu.memref_slice %arg8[%c7_i32_75, %c0_i32_78, %c0_i32_79] : memref<8x16x128xf32, #tpu.memory_space<vmem>> -> memref<1x8x128xf32, #tpu.memory_space<vmem>>
    %134 = tpu.memref_squeeze %133 : memref<1x8x128xf32, #tpu.memory_space<vmem>> -> memref<8x128xf32, #tpu.memory_space<vmem>>
    %135 = tpu.memref_slice %arg9[%c7_i32_76] : memref<8x!tpu.dma_semaphore, #tpu.memory_space<semaphore_mem>> -> memref<1x!tpu.dma_semaphore, #tpu.memory_space<semaphore_mem>>
    %136 = tpu.memref_squeeze %135 : memref<1x!tpu.dma_semaphore, #tpu.memory_space<semaphore_mem>> -> memref<!tpu.dma_semaphore, #tpu.memory_space<semaphore_mem>>
    tpu.wait_dma2 semaphore(%136 : memref<!tpu.dma_semaphore, #tpu.memory_space<semaphore_mem>>) src(%132 : memref<8x128xf32, #tpu.memory_space<any>>) dst(%134 : memref<8x128xf32, #tpu.memory_space<vmem>>)
    %c0_i32_80 = arith.constant 0 : i32
    %137 = arith.addi %0, %c0_i32_80 : i32
    %138 = arith.index_cast %137 : i32 to index
    %139 = memref.load %arg3[%138] : memref<8xi32, #tpu.memory_space<smem>>
    %c0 = arith.constant 0 : index
    %140 = arith.index_cast %139 : i32 to index
    %c0_81 = arith.constant 0 : index
    %141 = vector.load %arg8[%c0, %140, %c0_81] : memref<8x16x128xf32, #tpu.memory_space<vmem>>, vector<1x8x128xf32>
    %142 = vector.shape_cast %141 : vector<1x8x128xf32> to vector<8x128xf32>
    %c1_i32_82 = arith.constant 1 : i32
    %143 = arith.addi %0, %c1_i32_82 : i32
    %144 = arith.index_cast %143 : i32 to index
    %145 = memref.load %arg3[%144] : memref<8xi32, #tpu.memory_space<smem>>
    %c1 = arith.constant 1 : index
    %146 = arith.index_cast %145 : i32 to index
    %c0_83 = arith.constant 0 : index
    %147 = vector.load %arg8[%c1, %146, %c0_83] : memref<8x16x128xf32, #tpu.memory_space<vmem>>, vector<1x8x128xf32>
    %148 = vector.shape_cast %147 : vector<1x8x128xf32> to vector<8x128xf32>
    %c2_i32_84 = arith.constant 2 : i32
    %149 = arith.addi %0, %c2_i32_84 : i32
    %150 = arith.index_cast %149 : i32 to index
    %151 = memref.load %arg3[%150] : memref<8xi32, #tpu.memory_space<smem>>
    %c2 = arith.constant 2 : index
    %152 = arith.index_cast %151 : i32 to index
    %c0_85 = arith.constant 0 : index
    %153 = vector.load %arg8[%c2, %152, %c0_85] : memref<8x16x128xf32, #tpu.memory_space<vmem>>, vector<1x8x128xf32>
    %154 = vector.shape_cast %153 : vector<1x8x128xf32> to vector<8x128xf32>
    %c3_i32_86 = arith.constant 3 : i32
    %155 = arith.addi %0, %c3_i32_86 : i32
    %156 = arith.index_cast %155 : i32 to index
    %157 = memref.load %arg3[%156] : memref<8xi32, #tpu.memory_space<smem>>
    %c3 = arith.constant 3 : index
    %158 = arith.index_cast %157 : i32 to index
    %c0_87 = arith.constant 0 : index
    %159 = vector.load %arg8[%c3, %158, %c0_87] : memref<8x16x128xf32, #tpu.memory_space<vmem>>, vector<1x8x128xf32>
    %160 = vector.shape_cast %159 : vector<1x8x128xf32> to vector<8x128xf32>
    %c4_i32_88 = arith.constant 4 : i32
    %161 = arith.addi %0, %c4_i32_88 : i32
    %162 = arith.index_cast %161 : i32 to index
    %163 = memref.load %arg3[%162] : memref<8xi32, #tpu.memory_space<smem>>
    %c4 = arith.constant 4 : index
    %164 = arith.index_cast %163 : i32 to index
    %c0_89 = arith.constant 0 : index
    %165 = vector.load %arg8[%c4, %164, %c0_89] : memref<8x16x128xf32, #tpu.memory_space<vmem>>, vector<1x8x128xf32>
    %166 = vector.shape_cast %165 : vector<1x8x128xf32> to vector<8x128xf32>
    %c5_i32_90 = arith.constant 5 : i32
    %167 = arith.addi %0, %c5_i32_90 : i32
    %168 = arith.index_cast %167 : i32 to index
    %169 = memref.load %arg3[%168] : memref<8xi32, #tpu.memory_space<smem>>
    %c5 = arith.constant 5 : index
    %170 = arith.index_cast %169 : i32 to index
    %c0_91 = arith.constant 0 : index
    %171 = vector.load %arg8[%c5, %170, %c0_91] : memref<8x16x128xf32, #tpu.memory_space<vmem>>, vector<1x8x128xf32>
    %172 = vector.shape_cast %171 : vector<1x8x128xf32> to vector<8x128xf32>
    %c6_i32_92 = arith.constant 6 : i32
    %173 = arith.addi %0, %c6_i32_92 : i32
    %174 = arith.index_cast %173 : i32 to index
    %175 = memref.load %arg3[%174] : memref<8xi32, #tpu.memory_space<smem>>
    %c6 = arith.constant 6 : index
    %176 = arith.index_cast %175 : i32 to index
    %c0_93 = arith.constant 0 : index
    %177 = vector.load %arg8[%c6, %176, %c0_93] : memref<8x16x128xf32, #tpu.memory_space<vmem>>, vector<1x8x128xf32>
    %178 = vector.shape_cast %177 : vector<1x8x128xf32> to vector<8x128xf32>
    %c7_i32_94 = arith.constant 7 : i32
    %179 = arith.addi %0, %c7_i32_94 : i32
    %180 = arith.index_cast %179 : i32 to index
    %181 = memref.load %arg3[%180] : memref<8xi32, #tpu.memory_space<smem>>
    %c7 = arith.constant 7 : index
    %182 = arith.index_cast %181 : i32 to index
    %c0_95 = arith.constant 0 : index
    %183 = vector.load %arg8[%c7, %182, %c0_95] : memref<8x16x128xf32, #tpu.memory_space<vmem>>, vector<1x8x128xf32>
    %184 = vector.shape_cast %183 : vector<1x8x128xf32> to vector<8x128xf32>
    %185 = vector.shape_cast %142 : vector<8x128xf32> to vector<1x8x128xf32>
    %186 = vector.shape_cast %148 : vector<8x128xf32> to vector<1x8x128xf32>
    %187 = vector.shape_cast %154 : vector<8x128xf32> to vector<1x8x128xf32>
    %188 = vector.shape_cast %160 : vector<8x128xf32> to vector<1x8x128xf32>
    %189 = vector.shape_cast %166 : vector<8x128xf32> to vector<1x8x128xf32>
    %190 = vector.shape_cast %172 : vector<8x128xf32> to vector<1x8x128xf32>
    %191 = vector.shape_cast %178 : vector<8x128xf32> to vector<1x8x128xf32>
    %192 = vector.shape_cast %184 : vector<8x128xf32> to vector<1x8x128xf32>
    %193 = tpu.concatenate %185, %186, %187, %188, %189, %190, %191, %192 in 0 : vector<1x8x128xf32>, vector<1x8x128xf32>, vector<1x8x128xf32>, vector<1x8x128xf32>, vector<1x8x128xf32>, vector<1x8x128xf32>, vector<1x8x128xf32>, vector<1x8x128xf32> -> vector<8x8x128xf32>
    %c0_96 = arith.constant 0 : index
    %c0_97 = arith.constant 0 : index
    %194 = vector.load %arg5[%c0_96, %c0_97] : memref<8x1xi32, #tpu.memory_space<vmem>>, vector<8x1xi32>
    %195 = tpu.iota {dimensions = array<i32: 1>} : vector<8x8x1xi32>
    %196 = vector.shape_cast %194 : vector<8x1xi32> to vector<8x1x1xi32>
    %197 = vector.broadcast %196 : vector<8x1x1xi32> to vector<8x8x1xi32>
    %198 = arith.cmpi slt, %195, %197 : vector<8x8x1xi32>
    %cst = arith.constant 0.000000e+00 : f32
    %199 = vector.broadcast %cst : f32 to vector<8x8x128xf32>
    %200 = vector.shape_cast %198 : vector<8x8x1xi1> to vector<8x8x1xi1>
    %201 = vector.broadcast %200 : vector<8x8x1xi1> to vector<8x8x128xi1>
    %202 = arith.select %201, %193, %199 : vector<8x8x128xi1>, vector<8x8x128xf32>
    %c0_98 = arith.constant 0 : index
    %c0_99 = arith.constant 0 : index
    %c0_100 = arith.constant 0 : index
    %203 = vector.load %arg7[%c0_98, %c0_99, %c0_100] : memref<8x8x128xf32, #tpu.memory_space<vmem>>, vector<8x8x128xf32>
    tpu.vector_store %arg7[%c0_98, %c0_99, %c0_100], %202 {strides = array<i32>} : memref<8x8x128xf32, #tpu.memory_space<vmem>>, vector<8x8x128xf32>,
    %204 = vector.shape_cast %202 : vector<8x8x128xf32> to vector<64x128xf32>
    %205 = tpu.iota {dimensions = array<i32: 0>} : vector<8x64xi32>
    %206 = tpu.iota {dimensions = array<i32: 1>} : vector<8x64xi32>
    %c8_i32_101 = arith.constant 8 : i32
    %207 = vector.broadcast %c8_i32_101 : i32 to vector<8x64xi32>
    %208 = arith.muli %205, %207 : vector<8x64xi32>
    %209 = arith.cmpi sge, %206, %208 : vector<8x64xi32>
    %c1_i32_102 = arith.constant 1 : i32
    %210 = vector.broadcast %c1_i32_102 : i32 to vector<8x64xi32>
    %211 = arith.addi %205, %210 : vector<8x64xi32>
    %c8_i32_103 = arith.constant 8 : i32
    %212 = vector.broadcast %c8_i32_103 : i32 to vector<8x64xi32>
    %213 = arith.muli %211, %212 : vector<8x64xi32>
    %214 = arith.cmpi slt, %206, %213 : vector<8x64xi32>
    %215 = arith.andi %209, %214 : vector<8x64xi1>
    %cst_104 = arith.constant 1.000000e+00 : f32
    %cst_105 = arith.constant 0.000000e+00 : f32
    %216 = vector.broadcast %cst_104 : f32 to vector<8x64xf32>
    %217 = vector.broadcast %cst_105 : f32 to vector<8x64xf32>
    %218 = arith.select %215, %216, %217 : vector<8x64xi1>, vector<8x64xf32>
    %cst_106 = arith.constant dense<0.000000e+00> : vector<8x128xf32>
    %219 = tpu.matmul %218, %204, %cst_106 {dimension_numbers = #tpu.dot_dimension_numbers<[1], [0], [0], [1], [0, 0, 1, 1], [], []>} : vector<8x64xf32>, vector<64x128xf32>, vector<8x128xf32> -> vector<8x128xf32>
    %220 = arith.sitofp %194 : vector<8x1xi32> to vector<8x1xf32>
    %cst_107 = arith.constant 9.99999974E-6 : f32
    %221 = vector.broadcast %cst_107 : f32 to vector<8x1xf32>
    %222 = arith.addf %220, %221 : vector<8x1xf32>
    %223 = vector.broadcast %222 : vector<8x1xf32> to vector<8x128xf32>
    %224 = arith.divf %219, %223 : vector<8x128xf32>
    %c0_108 = arith.constant 0 : index
    %c0_109 = arith.constant 0 : index
    %225 = vector.load %arg6[%c0_108, %c0_109] : memref<8x128xf32, #tpu.memory_space<vmem>>, vector<8x128xf32>
    tpu.vector_store %arg6[%c0_108, %c0_109], %224 {strides = array<i32>} : memref<8x128xf32, #tpu.memory_space<vmem>>, vector<8x128xf32>,
    return
  }
  func.func @transform_1(%arg0: i32, %arg1: memref<8xi32, #tpu.memory_space<smem>>, %arg2: memref<8xi32, #tpu.memory_space<smem>>, %arg3: memref<8xi32, #tpu.memory_space<smem>>) -> (i32, i32) {
    %c0_i32 = arith.constant 0 : i32
    %c0_i32_0 = arith.constant 0 : i32
    return %arg0, %c0_i32 : i32, i32
  }
  func.func @transform_2(%arg0: i32, %arg1: memref<8xi32, #tpu.memory_space<smem>>, %arg2: memref<8xi32, #tpu.memory_space<smem>>, %arg3: memref<8xi32, #tpu.memory_space<smem>>) -> (i32, i32) {
    %c0_i32 = arith.constant 0 : i32
    %c0_i32_0 = arith.constant 0 : i32
    return %arg0, %c0_i32 : i32, i32
  }
  func.func @transform_3(%arg0: i32, %arg1: memref<8xi32, #tpu.memory_space<smem>>, %arg2: memref<8xi32, #tpu.memory_space<smem>>, %arg3: memref<8xi32, #tpu.memory_space<smem>>) -> (i32, i32, i32) {
    %c0_i32 = arith.constant 0 : i32
    %c0_i32_0 = arith.constant 0 : i32
    %c0_i32_1 = arith.constant 0 : i32
    return %arg0, %c0_i32, %c0_i32_0 : i32, i32, i32
  }
}

</mosaic_0001>

<bundles_post_ra>
// kernel: tpu_custom_call.1
= control target key start
LH: loop header
LB: loop body
LE: loop exit
PB: predicated region body
PF: predicated region fallthrough
CT: control target
= control target key end

     0   :  { %s1241_s0 = inlined_call_operand.vmem [shape: s32[8], index: 0, kind: input, shape index: {}]   ;;  %s1242_s3 = inlined_call_operand.hbm [shape: f32[3,24,128], index: 3, kind: input, shape index: {}]   ;;  %s1243_s4 = inlined_call_operand.vmem [shape: s32[8,1], index: 4, kind: input, shape index: {}]   ;;  %s1244_s5 = inlined_call_operand.hbm [shape: f32[8,128], index: 5, kind: output, shape index: {0}]   ;;  %s1245_s6 = inlined_call_operand.hbm [shape: f32[8,8,128], index: 6, kind: output, shape index: {1}]   ;;  %s1246_s1 = inlined_call_operand.vmem [shape: s32[8], index: 1, kind: input, shape index: {}]   ;;  %s1247_s2 = inlined_call_operand.vmem [shape: s32[8], index: 2, kind: input, shape index: {}]  }
   0x1   :  { %s12_s23 = sshll.u32 %s1241_s0, 4  ;;  %s16_s26 = sshll.u32 %s1246_s1, 4  ;;  %s13_s23 = int_to_ptr.vmem [resolvable:$true] %s12_s23  ;;  %s17_s26 = int_to_ptr.vmem [resolvable:$true] %s16_s26 }
   0x2   :  { %s714_s27 = scalar_lea.vmem %s13_s23, 16  ;;  %p719_p1 = scmp.lt.s32.totalorder %s13_s23, %s13_s23 }
   0x3   :  { %p715_p0 = scmp.ne.s32.totalorder %s13_s23, %s714_s27  ;;  %p720_p2 = scmp.lt.s32.totalorder %s714_s27, %s714_s27 }
   0x5   :  { %p721_p3 = por %p720_p2, %p719_p1 }
   0x7   :  { %p722_p4 = pnand %p721_p3, %p715_p0 }
   0x9   :  { %725 = shalt.err (!%p722_p4)  }
   0xa   :  { %s988_s28 = smov [#allocation5]   ;;  %s726_s29 = scalar_lea.vmem %s17_s26, 16 }
   0xb   :  { %15 = dma.vmem_to_smem %s13_s23, 16, %s988_s28, [#allocation4] }
   0xc   :  { %p727_p5 = scmp.ne.s32.totalorder %s17_s26, %s726_s29  ;;  %p731_p6 = scmp.lt.s32.totalorder %s17_s26, %s17_s26 }
   0xd   :  { %p732_p7 = scmp.lt.s32.totalorder %s726_s29, %s726_s29 }
   0xf   :  { %p733_p8 = por %p732_p7, %p731_p6 }
  0x11   :  { %p734_p9 = pnand %p733_p8, %p727_p5 }
  0x13   :  { %737 = shalt.err (!%p734_p9)  }
  0x14   :  { %s989_s0 = smov [#allocation6]   ;;  %s20_s7 = sshll.u32 %s1247_s2, 4  ;;  %s21_s7 = int_to_ptr.vmem [resolvable:$true] %s20_s7 }
  0x15   :  { %19 = dma.vmem_to_smem %s17_s26, 16, %s989_s0, [#allocation4] }
  0x16   :  { %s738_s8 = scalar_lea.vmem %s21_s7, 16  ;;  %p743_p11 = scmp.lt.s32.totalorder %s21_s7, %s21_s7 }
  0x17   :  { %p739_p10 = scmp.ne.s32.totalorder %s21_s7, %s738_s8  ;;  %p744_p12 = scmp.lt.s32.totalorder %s738_s8, %s738_s8 }
  0x19   :  { %p745_p13 = por %p744_p12, %p743_p11 }
  0x1b   :  { %p746_p0 = pnand %p745_p13, %p739_p10 }
  0x1d   :  { %749 = shalt.err (!%p746_p0)  }
  0x1e   :  { %s990_s9 = smov [#allocation7]  }
  0x1f   :  { %23 = dma.vmem_to_smem %s21_s7, 16, %s990_s9, [#allocation4] }
  0x20   :  { %966 = dma.done.wait [#allocation4], 48 }
  0x21   :  { %967 = vsyncadd [#allocation4], 4294967248 }
  0x22   :  { %25 = sfence }
  0x23   :  { %26 = vsyncpa [#allocation9], 0 }
  0x24   :  { %27 = vsyncpa [#allocation11], 0  ;;  %s31_s10 = sld [smem:[#allocation5]]  ;;  %s991_s12 = smov [#allocation2]  }
  0x25   :  { %s32_s11 = sld [smem:[#allocation6]]  ;;  %s44_s13 = sshll.u32 %s991_s12, 4  ;;  %s1051_s13 = int_to_ptr.vmem [resolvable:$true] %s44_s13 }
  0x26   :  { %s610_s2 = sld [smem:[#allocation5 + $0x1]]  ;;  %s992_s15 = smov [#allocation2 + $0x10]  }
  0x27   :  { %s611_s14 = sld [smem:[#allocation6 + $0x1]]  ;;  %s64_s16 = sshll.u32 %s992_s15, 4  ;;  %s1055_s16 = int_to_ptr.vmem [resolvable:$true] %s64_s16 }
  0x28   :  { %s1053_s17 = sld [smem:[#allocation5 + $0x2]]  ;;  %s993_s20 = smov [#allocation2 + $0x20]  }
  0x29   :  { %s1057_s18 = sld [smem:[#allocation6 + $0x2]]  ;;  %s84_s21 = sshll.u32 %s993_s20, 4  ;;  %s1061_s21 = int_to_ptr.vmem [resolvable:$true] %s84_s21 }
  0x2a   :  { %s33_s19 = smul.u32 24, %s31_s10  ;;  %s1059_s22 = sld [smem:[#allocation5 + $0x3]] }
  0x2b   :  { %s1069_s7 = scalar_lea.hbm %s1242_s3, 1152 }
  0x2c   :  { %s34_s23 = sadd.s32 %s33_s19, %s32_s11  ;;  %s51_s24 = smul.u32 24, %s610_s2 }
  0x2d   :  { %s609_s25 = sshll.u32 %s34_s23, 4 }
  0x2e   :  { %s36_s28 = scalar_lea.hbm %s1242_s3, %s609_s25  ;;  %s52_s29 = sadd.s32 %s611_s14, %s51_s24 }
  0x2f   :  { %s750_s0 = scalar_lea.hbm %s36_s28, 128  ;;  %p753_p2 = scmp.lt.s32.totalorder %s36_s28, %s1242_s3 }
  0x30   :  { %p751_p1 = scmp.ne.s32.totalorder %s36_s28, %s750_s0  ;;  %p754_p3 = scmp.lt.s32.totalorder %s1069_s7, %s750_s0 }
  0x32   :  { %p755_p4 = por %p754_p3, %p753_p2 }
  0x34   :  { %p756_p5 = pnand %p755_p4, %p751_p1 }
  0x36   :  { %759 = shalt.err (!%p756_p5)  }
  0x37   :  { %s760_s10 = scalar_lea.vmem %s1051_s13, 128  ;;  %s1078_s11 = scalar_lea.vmem %s1051_s13, 2048 }
  0x38   :  { %p761_p6 = scmp.ne.s32.totalorder %s1051_s13, %s760_s10  ;;  %p765_p7 = scmp.lt.s32.totalorder %s1051_s13, %s1051_s13 }
  0x39   :  { %p766_p8 = scmp.lt.s32.totalorder %s1078_s11, %s760_s10 }
  0x3b   :  { %p767_p9 = por %p766_p8, %p765_p7 }
  0x3d   :  { %p768_p10 = pnand %p767_p9, %p761_p6 }
  0x3f   :  { %771 = shalt.err (!%p768_p10)  }
  0x40   :  { %47 = dma.hbm_to_vmem [thread:$0]  %s36_s28, 128, %s1051_s13, [#allocation3] }
  0x41   :  { %s612_s12 = sshll.u32 %s52_s29, 4  ;;  %s71_s2 = smul.u32 24, %s1053_s17 }
  0x42   :  { %s54_s19 = scalar_lea.hbm %s1242_s3, %s612_s12  ;;  %s1088_s20 = sld [smem:[#allocation6 + $0x3]] }
  0x43   :  { %s772_s23 = scalar_lea.hbm %s54_s19, 128  ;;  %p775_p12 = scmp.lt.s32.totalorder %s54_s19, %s1242_s3 }
  0x44   :  { %p773_p11 = scmp.ne.s32.totalorder %s54_s19, %s772_s23  ;;  %p776_p13 = scmp.lt.s32.totalorder %s1069_s7, %s772_s23 }
  0x46   :  { %p777_p0 = por %p776_p13, %p775_p12 }
  0x48   :  { %p778_p1 = pnand %p777_p0, %p773_p11 }
  0x4a   :  { %781 = shalt.err (!%p778_p1)  }
  0x4b   :  { %s782_s17 = scalar_lea.vmem %s1055_s16, 128  ;;  %p787_p3 = scmp.lt.s32.totalorder %s1055_s16, %s1051_s13 }
  0x4c   :  { %p783_p2 = scmp.ne.s32.totalorder %s1055_s16, %s782_s17  ;;  %p788_p4 = scmp.lt.s32.totalorder %s1078_s11, %s782_s17 }
  0x4e   :  { %p789_p5 = por %p788_p4, %p787_p3 }
  0x50   :  { %p790_p6 = pnand %p789_p5, %p783_p2 }
  0x52   :  { %793 = shalt.err (!%p790_p6)  }
  0x53   :  { %67 = dma.hbm_to_vmem [thread:$0]  %s54_s19, 128, %s1055_s16, [#allocation3 + $0x1] }
  0x54   :  { %s72_s26 = sadd.s32 %s1057_s18, %s71_s2  ;;  %s91_s27 = smul.u32 24, %s1059_s22 }
  0x55   :  { %s615_s28 = sshll.u32 %s72_s26, 4  ;;  %s994_s30 = smov [#allocation2 + $0x30]  }
  0x56   :  { %s74_s1 = scalar_lea.hbm %s1242_s3, %s615_s28  ;;  %s104_s8 = sshll.u32 %s994_s30, 4  ;;  %s105_s8 = int_to_ptr.vmem [resolvable:$true] %s104_s8 }
  0x57   :  { %s794_s9 = scalar_lea.hbm %s74_s1, 128  ;;  %p797_p8 = scmp.lt.s32.totalorder %s74_s1, %s1242_s3 }
  0x58   :  { %p795_p7 = scmp.ne.s32.totalorder %s74_s1, %s794_s9  ;;  %p798_p9 = scmp.lt.s32.totalorder %s1069_s7, %s794_s9 }
  0x5a   :  { %p799_p10 = por %p798_p9, %p797_p8 }
  0x5c   :  { %p800_p11 = pnand %p799_p10, %p795_p7 }
  0x5e   :  { %803 = shalt.err (!%p800_p11)  }
  0x5f   :  { %s804_s16 = scalar_lea.vmem %s1061_s21, 128  ;;  %p809_p13 = scmp.lt.s32.totalorder %s1061_s21, %s1051_s13 }
  0x60   :  { %p805_p12 = scmp.ne.s32.totalorder %s1061_s21, %s804_s16  ;;  %p810_p0 = scmp.lt.s32.totalorder %s1078_s11, %s804_s16 }
  0x62   :  { %p811_p1 = por %p810_p0, %p809_p13 }
  0x64   :  { %p812_p2 = pnand %p811_p1, %p805_p12 }
  0x66   :  { %815 = shalt.err (!%p812_p2)  }
  0x67   :  { %87 = dma.hbm_to_vmem [thread:$0]  %s74_s1, 128, %s1061_s21, [#allocation3 + $0x2] }
  0x68   :  { %s92_s18 = sadd.s32 %s1088_s20, %s91_s27  ;;  %s1116_s2 = sld [smem:[#allocation5 + $0x4]] }
  0x69   :  { %s618_s22 = sshll.u32 %s92_s18, 4  ;;  %s620_s23 = sld [smem:[#allocation6 + $0x4]] }
  0x6a   :  { %s94_s19 = scalar_lea.hbm %s1242_s3, %s618_s22 }
  0x6b   :  { %s816_s24 = scalar_lea.hbm %s94_s19, 128  ;;  %p819_p4 = scmp.lt.s32.totalorder %s94_s19, %s1242_s3 }
  0x6c   :  { %p817_p3 = scmp.ne.s32.totalorder %s94_s19, %s816_s24  ;;  %p820_p5 = scmp.lt.s32.totalorder %s1069_s7, %s816_s24 }
  0x6e   :  { %p821_p6 = por %p820_p5, %p819_p4 }
  0x70   :  { %p822_p7 = pnand %p821_p6, %p817_p3 }
  0x72   :  { %825 = shalt.err (!%p822_p7)  }
  0x73   :  { %s826_s21 = scalar_lea.vmem %s105_s8, 128  ;;  %p831_p9 = scmp.lt.s32.totalorder %s105_s8, %s1051_s13 }
  0x74   :  { %p827_p8 = scmp.ne.s32.totalorder %s105_s8, %s826_s21  ;;  %p832_p10 = scmp.lt.s32.totalorder %s1078_s11, %s826_s21 }
  0x76   :  { %p833_p11 = por %p832_p10, %p831_p9 }
  0x78   :  { %p834_p12 = pnand %p833_p11, %p827_p8 }
  0x7a   :  { %837 = shalt.err (!%p834_p12)  }
  0x7b   :  { %107 = dma.hbm_to_vmem [thread:$0]  %s94_s19, 128, %s105_s8, [#allocation3 + $0x3] }
  0x7c   :  { %s1127_s20 = sld [smem:[#allocation5 + $0x5]]  ;;  %s995_s26 = smov [#allocation2 + $0x40]  }
  0x7d   :  { %s124_s27 = sshll.u32 %s995_s26, 4  ;;  %s623_s28 = sld [smem:[#allocation6 + $0x5]]  ;;  %s125_s27 = int_to_ptr.vmem [resolvable:$true] %s124_s27 }
  0x7e   :  { %s111_s29 = smul.u32 24, %s1116_s2  ;;  %s996_s0 = smov [#allocation2 + $0x50]  }
  0x7f   :  { %s144_s1 = sshll.u32 %s996_s0, 4  ;;  %s1132_s30 = sld [smem:[#allocation5 + $0x6]]  ;;  %s1130_s1 = int_to_ptr.vmem [resolvable:$true] %s144_s1 }
  0x80   :  { %s112_s9 = sadd.s32 %s620_s23, %s111_s29  ;;  %s1134_s10 = sld [smem:[#allocation6 + $0x6]] }
  0x81   :  { %s621_s8 = sshll.u32 %s112_s9, 4 }
  0x82   :  { %s131_s12 = smul.u32 24, %s1127_s20  ;;  %s114_s22 = scalar_lea.hbm %s1242_s3, %s621_s8 }
  0x83   :  { %s838_s14 = scalar_lea.hbm %s114_s22, 128  ;;  %p841_p0 = scmp.lt.s32.totalorder %s114_s22, %s1242_s3 }
  0x84   :  { %p839_p13 = scmp.ne.s32.totalorder %s114_s22, %s838_s14  ;;  %p842_p1 = scmp.lt.s32.totalorder %s1069_s7, %s838_s14 }
  0x86   :  { %p843_p2 = por %p842_p1, %p841_p0 }
  0x88   :  { %p844_p3 = pnand %p843_p2, %p839_p13 }
  0x8a   :  { %847 = shalt.err (!%p844_p3)  }
  0x8b   :  { %s848_s2 = scalar_lea.vmem %s125_s27, 128  ;;  %p853_p5 = scmp.lt.s32.totalorder %s125_s27, %s1051_s13 }
  0x8c   :  { %p849_p4 = scmp.ne.s32.totalorder %s125_s27, %s848_s2  ;;  %p854_p6 = scmp.lt.s32.totalorder %s1078_s11, %s848_s2 }
  0x8e   :  { %p855_p7 = por %p854_p6, %p853_p5 }
  0x90   :  { %p856_p8 = pnand %p855_p7, %p849_p4 }
  0x92   :  { %859 = shalt.err (!%p856_p8)  }
  0x93   :  { %127 = dma.hbm_to_vmem [thread:$0]  %s114_s22, 128, %s125_s27, [#allocation3 + $0x4] }
  0x94   :  { %s132_s23 = sadd.s32 %s623_s28, %s131_s12  ;;  %s997_s24 = smov [#allocation2 + $0x60]  }
  0x95   :  { %s164_s25 = sshll.u32 %s997_s24, 4  ;;  %s624_s17 = sshll.u32 %s132_s23, 4  ;;  %s1150_s25 = int_to_ptr.vmem [resolvable:$true] %s164_s25 }
  0x96   :  { %s151_s21 = smul.u32 24, %s1132_s30  ;;  %s134_s29 = scalar_lea.hbm %s1242_s3, %s624_s17 }
  0x97   :  { %s860_s0 = scalar_lea.hbm %s134_s29, 128  ;;  %p863_p10 = scmp.lt.s32.totalorder %s134_s29, %s1242_s3 }
  0x98   :  { %p861_p9 = scmp.ne.s32.totalorder %s134_s29, %s860_s0  ;;  %p864_p11 = scmp.lt.s32.totalorder %s1069_s7, %s860_s0 }
  0x9a   :  { %p865_p12 = por %p864_p11, %p863_p10 }
  0x9c   :  { %p866_p13 = pnand %p865_p12, %p861_p9 }
  0x9e   :  { %869 = shalt.err (!%p866_p13)  }
  0x9f   :  { %s870_s27 = scalar_lea.vmem %s1130_s1, 128  ;;  %p875_p1 = scmp.lt.s32.totalorder %s1130_s1, %s1051_s13 }
  0xa0   :  { %p871_p0 = scmp.ne.s32.totalorder %s1130_s1, %s870_s27  ;;  %p876_p2 = scmp.lt.s32.totalorder %s1078_s11, %s870_s27 }
  0xa2   :  { %p877_p3 = por %p876_p2, %p875_p1 }
  0xa4   :  { %p878_p4 = pnand %p877_p3, %p871_p0 }
  0xa6   :  { %881 = shalt.err (!%p878_p4)  }
  0xa7   :  { %147 = dma.hbm_to_vmem [thread:$0]  %s134_s29, 128, %s1130_s1, [#allocation3 + $0x5] }
  0xa8   :  { %s152_s28 = sadd.s32 %s1134_s10, %s151_s21  ;;  %s628_s30 = sld [smem:[#allocation5 + $0x7]] }
  0xa9   :  { %s627_s12 = sshll.u32 %s152_s28, 4  ;;  %s629_s16 = sld [smem:[#allocation6 + $0x7]] }
  0xaa   :  { %s154_s14 = scalar_lea.hbm %s1242_s3, %s627_s12 }
  0xab   :  { %s882_s15 = scalar_lea.hbm %s154_s14, 128  ;;  %p885_p6 = scmp.lt.s32.totalorder %s154_s14, %s1242_s3 }
  0xac   :  { %p883_p5 = scmp.ne.s32.totalorder %s154_s14, %s882_s15  ;;  %p886_p7 = scmp.lt.s32.totalorder %s1069_s7, %s882_s15 }
  0xae   :  { %p887_p8 = por %p886_p7, %p885_p6 }
  0xb0   :  { %p888_p9 = pnand %p887_p8, %p883_p5 }
  0xb2   :  { %891 = shalt.err (!%p888_p9)  }
  0xb3   :  { %s892_s1 = scalar_lea.vmem %s1150_s25, 128  ;;  %p897_p11 = scmp.lt.s32.totalorder %s1150_s25, %s1051_s13 }
  0xb4   :  { %p893_p10 = scmp.ne.s32.totalorder %s1150_s25, %s892_s1  ;;  %p898_p12 = scmp.lt.s32.totalorder %s1078_s11, %s892_s1 }
  0xb6   :  { %p899_p13 = por %p898_p12, %p897_p11 }
  0xb8   :  { %p900_p0 = pnand %p899_p13, %p893_p10 }
  0xba   :  { %903 = shalt.err (!%p900_p0)  }
  0xbb   :  { %167 = dma.hbm_to_vmem [thread:$0]  %s154_s14, 128, %s1150_s25, [#allocation3 + $0x6] }
  0xbc   :  { %s998_s10 = smov [#allocation2 + $0x70]   ;;  %s171_s24 = smul.u32 24, %s628_s30 }
  0xbd   :  { %s184_s23 = sshll.u32 %s998_s10, 4  ;;  %s185_s23 = int_to_ptr.vmem [resolvable:$true] %s184_s23 }
  0xbe   :  { %s172_s17 = sadd.s32 %s629_s16, %s171_s24 }
  0xbf   :  { %s630_s21 = sshll.u32 %s172_s17, 4 }
  0xc0   :  { %s174_s29 = scalar_lea.hbm %s1242_s3, %s630_s21 }
  0xc1   :  { %s904_s0 = scalar_lea.hbm %s174_s29, 128  ;;  %p907_p2 = scmp.lt.s32.totalorder %s174_s29, %s1242_s3 }
  0xc2   :  { %p905_p1 = scmp.ne.s32.totalorder %s174_s29, %s904_s0  ;;  %p908_p3 = scmp.lt.s32.totalorder %s1069_s7, %s904_s0 }
  0xc4   :  { %p909_p4 = por %p908_p3, %p907_p2 }
  0xc6   :  { %p910_p5 = pnand %p909_p4, %p905_p1 }
  0xc8   :  { %913 = shalt.err (!%p910_p5)  }
  0xc9   :  { %s914_s25 = scalar_lea.vmem %s185_s23, 128  ;;  %p919_p7 = scmp.lt.s32.totalorder %s185_s23, %s1051_s13 }
  0xca   :  { %p915_p6 = scmp.ne.s32.totalorder %s185_s23, %s914_s25  ;;  %p920_p8 = scmp.lt.s32.totalorder %s1078_s11, %s914_s25 }
  0xcc   :  { %p921_p9 = por %p920_p8, %p919_p7 }
  0xce   :  { %p922_p10 = pnand %p921_p9, %p915_p6 }
  0xd0   :  { %925 = shalt.err (!%p922_p10)  }
  0xd1   :  { %187 = dma.hbm_to_vmem [thread:$0]  %s174_s29, 128, %s185_s23, [#allocation3 + $0x7] }
  0xd2   :  { %968 = dma.done.wait [#allocation3], 128 }
  0xd3   :  { %969 = vsyncadd [#allocation3], 4294967168 }
  0xd4   :  { %970 = dma.done.wait [#allocation3 + $0x1], 128 }
  0xd5   :  { %971 = vsyncadd [#allocation3 + $0x1], 4294967168 }
  0xd6   :  { %972 = dma.done.wait [#allocation3 + $0x2], 128 }
  0xd7   :  { %973 = vsyncadd [#allocation3 + $0x2], 4294967168 }
  0xd8   :  { %974 = dma.done.wait [#allocation3 + $0x3], 128 }
  0xd9   :  { %975 = vsyncadd [#allocation3 + $0x3], 4294967168 }
  0xda   :  { %976 = dma.done.wait [#allocation3 + $0x4], 128 }
  0xdb   :  { %977 = vsyncadd [#allocation3 + $0x4], 4294967168 }
  0xdc   :  { %978 = dma.done.wait [#allocation3 + $0x5], 128 }
  0xdd   :  { %979 = vsyncadd [#allocation3 + $0x5], 4294967168 }
  0xde   :  { %980 = dma.done.wait [#allocation3 + $0x6], 128 }
  0xdf   :  { %981 = vsyncadd [#allocation3 + $0x6], 4294967168 }
  0xe0   :  { %982 = dma.done.wait [#allocation3 + $0x7], 128 }
  0xe1   :  { %983 = vsyncadd [#allocation3 + $0x7], 4294967168  ;;  %v237_v0 = vlaneseq  ;;  %v999_v1 = vmov 0   ;;  %v1000_v2 = vmov 1966171168   ;;  %v236_v7 = vld [vmem:[%s1243_s4] sm:$0xff] }
  0xe2   :  { %710 = vset.pattern.permute.xlu1 %v999_v1  ;;  %v241_v3 = vunpack.c.l.s4 %v1000_v2  ;;  %709 = vset.pattern.permute.xlu0 %v999_v1  ;;  %v239_v8 = vcombine.high %v236_v7, %v236_v7  ;;  %v1001_v31 = vmov 0.0   ;;  %v467_v39 = vcvt.s32.f32 %v236_v7  ;;  %s639_s4 = sld [smem:[#allocation7 + $0x5]]  ;;  %s1003_s23 = smov [#allocation10]  }
  0xe3   :  { %v238_v4 = vshrl.u32 %v237_v0, 7  ;;  %671 = vmatprep.subr.mxu0 %v1001_v31  ;;  %v385_v41 = vand.u32 127, %v237_v0  ;;  %vm1002_vm11 = vmmov 0   ;;  %s643_s7 = sld [smem:[#allocation7 + $0x7]]  ;;  %s492_s24 = sshll.u32 %s1003_s23, 4  ;;  %s493_s24 = int_to_ptr.vmem [resolvable:$true] %s492_s24 }
  0xe4   :  { %v242_v5 = vunpack.c.0.s8 %v241_v3  ;;  %v468_v46 = vadd.f32 1e-05, %v467_v39  ;;  %687 = vmatprep.mubr.msk.f32.mxu0 %vm1002_vm11, %v1001_v31  ;;  %s637_s11 = sld [smem:[#allocation7 + $0x4]]  ;;  %s926_s17 = scalar_lea.vmem %s493_s24, 1024 }
  0xe5   :  { %v290_v14 = vsub.s32 0, %v238_v4  ;;  %v388_v38 = vadd.s32 1, %v238_v4  ;;  %v386_v42 = vmul.u32 8, %v238_v4  ;;  %s641_s27 = sld [smem:[#allocation7 + $0x6]]  ;;  %p927_p11 = scmp.ne.s32.totalorder %s493_s24, %s926_s17 }
  0xe6   :  { %v245_v6 = vsub.s32 %v242_v5, %v238_v4  ;;  %s1202_s28 = sld [smem:[#allocation7 + $0x2]]  ;;  %p931_p12 = scmp.lt.s32.totalorder %s493_s24, %s493_s24 }
  0xe7   :  { %v389_v43 = vmul.u32 8, %v388_v38  ;;  %vm1189_vm8 = vcmp.ge.s32.totalorder %v385_v41, %v386_v42  ;;  %s1204_s30 = sld [smem:[#allocation7 + $0x3]]  ;;  %p932_p13 = scmp.lt.s32.totalorder %s926_s17, %s926_s17 }
  0xe8   :  { %v246_v9 = vrot.slane %v236_v7, %v245_v6  ;;  %v253_v10 = vrot.slane %v239_v8, %v245_v6  ;;  %s603_s12 = scalar_lea.vmem [#allocation2], %s639_s4  ;;  %s1206_s16 = sld [smem:[#allocation7]] }
  0xe9   :  { %vm1193_vm9 = vcmp.lt.s32.totalorder %v385_v41, %v389_v43  ;;  %v640_v47 = vld [vmem:[%s603_s12 + $0x50] sm:$0xff]  ;;  %s607_s18 = scalar_lea.vmem [#allocation2], %s643_s7  ;;  %s1209_s22 = sld [smem:[#allocation7 + $0x1]] }
  0xea   :  { %v262_v11 = vrot.slane %v246_v9, %v245_v6  ;;  %v254_v12 = vcombine.high %v246_v9, %v246_v9  ;;  %v255_v13 = vcombine.high %v253_v10, %v253_v10  ;;  %v269_v15 = vrot.slane %v253_v10, %v245_v6  ;;  %vm391_vm10 = vmand %vm1189_vm8, %vm1193_vm9  ;;  %v644_v49 = vld [vmem:[%s607_s18 + $0x70] sm:$0xff]  ;;  %s601_s14 = scalar_lea.vmem [#allocation2], %s637_s11  ;;  %p933_p0 = por %p932_p13, %p931_p12 }
  0xeb   :  { %v638_v52 = vld [vmem:[%s601_s14 + $0x40] sm:$0xff]  ;;  %s605_s15 = scalar_lea.vmem [#allocation2], %s641_s27  ;;  %v392_v7 = vsel %vm391_vm10, 1.0, %v1001_v31 }
  0xec   :  { %v276_v16 = vrot.slane %v254_v12, %v245_v6  ;;  %v283_v17 = vrot.slane %v255_v13, %v245_v6  ;;  %v307_v18 = vrot.slane %v269_v15, %v290_v14  ;;  %v285_v19 = vcombine.high %v269_v15, %v269_v15  ;;  %v642_v55 = vld [vmem:[%s605_s15 + $0x60] sm:$0xff]  ;;  %s597_s19 = scalar_lea.vmem [#allocation2], %s1202_s28  ;;  %p934_p1 = pnand %p933_p0, %p927_p11 }
  0xed   :  { %v284_v20 = vcombine.high %v262_v11, %v262_v11  ;;  %v291_v32 = vrot.slane %v262_v11, %v290_v14  ;;  %v634_v58 = vld [vmem:[%s597_s19 + $0x20] sm:$0xff]  ;;  %s599_s2 = scalar_lea.vmem [#allocation2], %s1204_s30 }
  0xee   :  { %v311_v21 = vrot.slane %v283_v17, %v290_v14  ;;  %v287_v22 = vcombine.high %v283_v17, %v283_v17  ;;  %v315_v23 = vrot.slane %v285_v19, %v290_v14  ;;  %v286_v24 = vcombine.high %v276_v16, %v276_v16  ;;  %v636_v61 = vld [vmem:[%s599_s2 + $0x30] sm:$0xff]  ;;  %s206_s1 = scalar_lea.vmem [#allocation2], %s1206_s16 }
  0xef   :  { %vm324_vm1 = vcmp.lt.s32.totalorder %v238_v4, %v307_v18  ;;  %v299_v26 = vrot.slane %v284_v20, %v290_v14  ;;  %v295_v34 = vrot.slane %v276_v16, %v290_v14  ;;  %vm320_vm6 = vcmp.lt.s32.totalorder %v238_v4, %v291_v32  ;;  %v207_v0 = vld [vmem:[%s206_s1] sm:$0xff]  ;;  %s595_s10 = scalar_lea.vmem [#allocation2], %s1209_s22 }
  0xf0   :  { %vm325_vm0 = vcmp.lt.s32.totalorder %v238_v4, %v311_v21  ;;  %v319_v25 = vrot.slane %v287_v22, %v290_v14  ;;  %vm326_vm3 = vcmp.lt.s32.totalorder %v238_v4, %v315_v23  ;;  %v303_v28 = vrot.slane %v286_v24, %v290_v14  ;;  %v632_v3 = vld [vmem:[%s595_s10 + $0x10] sm:$0xff] }
  0xf1   :  { %v333_v27 = vsel %vm325_vm0, 1, %v999_v1  ;;  %v332_v30 = vsel %vm324_vm1, 1, %v999_v1  ;;  %vm322_vm4 = vcmp.lt.s32.totalorder %v238_v4, %v299_v26  ;;  %v334_v33 = vsel %vm326_vm3, 1, %v999_v1 }
  0xf2   :  { %352 = vperm.xlu1 %710, %v333_v27   ;;  %vm327_vm2 = vcmp.lt.s32.totalorder %v238_v4, %v319_v25  ;;  %vm323_vm5 = vcmp.lt.s32.totalorder %v238_v4, %v303_v28  ;;  %v330_v35 = vsel %vm322_vm4, 1, %v999_v1  ;;  %vm321_vm7 = vcmp.lt.s32.totalorder %v238_v4, %v295_v34 }
  0xf3   :  { %v335_v29 = vsel %vm327_vm2, 1, %v999_v1  ;;  %v331_v36 = vsel %vm323_vm5, 1, %v999_v1  ;;  %v328_v37 = vsel %vm320_vm6, 1, %v999_v1  ;;  %v329_v40 = vsel %vm321_vm7, 1, %v999_v1 }
  0xf4   :  { %358 = vperm.xlu0 %709, %v335_v29   ;;  %vm393_vm4 = vcmask 523264  }
  0xf6   :  { %349 = vperm.xlu1 %710, %v332_v30  }
  0xf8   :  { %355 = vperm.xlu0 %709, %v334_v33  }
  0xfa   :  { %343 = vperm.xlu1 %710, %v330_v35  }
  0xfc   :  { %346 = vperm.xlu0 %709, %v331_v36  }
  0xfe   :  { %337 = vperm.xlu1 %710, %v328_v37  }
 0x100   :  { %340 = vperm.xlu0 %709, %v329_v40  }
 0x104   :  { %471 = vperm.xlu0 %709, %v468_v46  }
 0x16d   :  { %v353_v48 = vpop.permute.xlu1 %352 }
 0x16e   :  { %vm365_vm12 = vcmp.eq.s32.totalorder %v353_v48, 1 }
 0x16f   :  { %v373_v50 = vsel %vm365_vm12, %v640_v47, 0.0  ;;  %v359_v51 = vpop.permute.xlu0 %358 }
 0x170   :  { %381 = vst [vmem:[#allocation10 + $0x28] sm:$0xff] %v373_v50  ;;  %vm367_vm13 = vcmp.eq.s32.totalorder %v359_v51, 1 }
 0x171   :  { %v375_v53 = vsel %vm367_vm13, %v644_v49, 0.0  ;;  %v350_v54 = vpop.permute.xlu1 %349  ;;  %672 = vmatpush3.msk.msra.mxu0 %vm367_vm13, %v644_v49 }
 0x172   :  { %383 = vst [vmem:[#allocation10 + $0x38] sm:$0xff] %v375_v53  ;;  %vm364_vm14 = vcmp.eq.s32.totalorder %v350_v54, 1  ;;  %673 = vmatprep.subr.mxu0 %v1001_v31 }
 0x173   :  { %v372_v56 = vsel %vm364_vm14, %v638_v52, 0.0  ;;  %v356_v57 = vpop.permute.xlu0 %355 }
 0x174   :  { %380 = vst [vmem:[#allocation10 + $0x20] sm:$0xff] %v372_v56  ;;  %vm366_vm15 = vcmp.eq.s32.totalorder %v356_v57, 1 }
 0x175   :  { %v374_v59 = vsel %vm366_vm15, %v642_v55, 0.0  ;;  %v344_v60 = vpop.permute.xlu1 %343  ;;  %674 = vmatpush3.msk.msra.mxu0 %vm366_vm15, %v642_v55 }
 0x176   :  { %382 = vst [vmem:[#allocation10 + $0x30] sm:$0xff] %v374_v59  ;;  %vm362_vm0 = vcmp.eq.s32.totalorder %v344_v60, 1  ;;  %675 = vmatprep.subr.mxu0 %v1001_v31 }
 0x177   :  { %v370_v62 = vsel %vm362_vm0, %v634_v58, 0.0  ;;  %v347_v63 = vpop.permute.xlu0 %346  ;;  %676 = vmatpush3.msk.msra.mxu0 %vm365_vm12, %v640_v47 }
 0x178   :  { %378 = vst [vmem:[#allocation10 + $0x10] sm:$0xff] %v370_v62  ;;  %vm363_vm1 = vcmp.eq.s32.totalorder %v347_v63, 1  ;;  %677 = vmatprep.subr.mxu0 %v1001_v31 }
 0x179   :  { %v371_v1 = vsel %vm363_vm1, %v636_v61, 0.0  ;;  %v338_v2 = vpop.permute.xlu1 %337  ;;  %678 = vmatpush3.msk.msra.mxu0 %vm364_vm14, %v638_v52 }
 0x17a   :  { %379 = vst [vmem:[#allocation10 + $0x18] sm:$0xff] %v371_v1  ;;  %vm360_vm2 = vcmp.eq.s32.totalorder %v338_v2, 1  ;;  %679 = vmatprep.subr.mxu0 %v1001_v31 }
 0x17b   :  { %v368_v4 = vsel %vm360_vm2, %v207_v0, 0.0  ;;  %v341_v5 = vpop.permute.xlu0 %340  ;;  %680 = vmatpush3.msk.msra.mxu0 %vm363_vm1, %v636_v61 }
 0x17c   :  { %376 = vst [vmem:[#allocation10] sm:$0xff] %v368_v4  ;;  %vm361_vm3 = vcmp.eq.s32.totalorder %v341_v5, 1  ;;  %681 = vmatprep.subr.mxu0 %v1001_v31 }
 0x17d   :  { %v369_v6 = vsel %vm361_vm3, %v632_v3, 0.0  ;;  %682 = vmatpush3.msk.msra.mxu0 %vm362_vm0, %v634_v58 }
 0x17e   :  { %377 = vst [vmem:[#allocation10 + $0x8] sm:$0xff] %v369_v6  ;;  %683 = vmatprep.subr.mxu0 %v1001_v31 }
 0x17f   :  { %684 = vmatpush3.msk.msra.mxu0 %vm361_vm3, %v632_v3 }
 0x180   :  { %685 = vmatprep.subr.mxu0 %v1001_v31 }
 0x181   :  { %686 = vmatpush3.msk.msra.mxu0 %vm360_vm2, %v207_v0 }
 0x182   :  { %688 = vmatmul.mubr.msk.f32.vlgmr.msra.gmra.mxu0 %vm393_vm4, %v392_v7 }
 0x183   :  { %937 = shalt.err (!%p934_p1)
}
 0x184   :  { %s1004_s21 = smov 128   ;;  %s1005_s20 = smov 8   ;;  %v472_v8 = vpop.permute.xlu0 %471 }
 0x185   :  { %498 = dma.vmem_to_hbm [thread:$0]  %s493_s24, 1024, %s1245_s6, [#allocation11], %s1004_s21, %s1004_s21, %s1005_s20   ;;  %712 = vrcp.f32 %v472_v8 }
 0x186   :  { %s1006_s0 = smov [#allocation8]  }
 0x187   :  { %s483_s9 = sshll.u32 %s1006_s0, 4  ;;  %s484_s9 = int_to_ptr.vmem [resolvable:$true] %s483_s9 }
 0x188   :  { %s946_s8 = scalar_lea.vmem %s484_s9, 128  ;;  %p951_p3 = scmp.lt.s32.totalorder %s484_s9, %s484_s9 }
 0x189   :  { %p947_p2 = scmp.ne.s32.totalorder %s484_s9, %s946_s8  ;;  %p952_p4 = scmp.lt.s32.totalorder %s946_s8, %s946_s8 }
 0x18b   :  { %p953_p5 = por %p952_p4, %p951_p3 }
 0x18d   :  { %p954_p6 = pnand %p953_p5, %p947_p2 }
 0x192   :  { %v713_v9 = vpop.eup %712 }
 0x242   :  { %v463_v10 = vpop.f32.mrf.mxu0 }
 0x243   :  { %v475_v11 = vmul.f32 %v713_v9, %v463_v10 }
 0x244   :  { %v689_v12 = vpop.f32.mrf.mxu0 }
 0x245   :  { %476 = vst [vmem:[#allocation8] sm:$0xff] %v475_v11 }
 0x246   :  { %957 = shalt.err (!%p954_p6)
}
 0x247   :  { %486 = dma.vmem_to_hbm [thread:$0]  %s484_s9, 128, %s1244_s5, [#allocation9]  }
 0x248   :  { %984 = dma.done.wait [#allocation9], 128  }
 0x249   :  { %985 = vsyncadd [#allocation9], 4294967168 }
 0x24a   :  { %986 = dma.done.wait [#allocation11], 1024  }
 0x24b   :  { %987 = vsyncadd [#allocation11], 4294966272 }
 0x24c   :  { %505 = vsyncpa [#allocation9], 1 }
 0x24d   :  { %506 = vsyncpa [#allocation11], 1 }
 0x24e   :  { %507 = vsyncmov [#allocation3] }
 0x251   :  { %s508_s6 = vpop.sfrf %507 }
 0x252   :  { %p654_p7 = scmp.ne.s32.totalorder %s508_s6, 0 }
 0x254   :  { %512 = shalt.err (%p654_p7)  }
 0x255   :  { %514 = vsyncmov [#allocation3 + $0x1] }
 0x258   :  { %s515_s13 = vpop.sfrf %514 }
 0x259   :  { %p655_p8 = scmp.ne.s32.totalorder %s515_s13, 0 }
 0x25b   :  { %519 = shalt.err (%p655_p8)  }
 0x25c   :  { %521 = vsyncmov [#allocation3 + $0x2] }
 0x25f   :  { %s522_s4 = vpop.sfrf %521 }
 0x260   :  { %p656_p9 = scmp.ne.s32.totalorder %s522_s4, 0 }
 0x262   :  { %526 = shalt.err (%p656_p9)  }
 0x263   :  { %528 = vsyncmov [#allocation3 + $0x3] }
 0x266   :  { %s529_s5 = vpop.sfrf %528 }
 0x267   :  { %p657_p10 = scmp.ne.s32.totalorder %s529_s5, 0 }
 0x269   :  { %533 = shalt.err (%p657_p10)  }
 0x26a   :  { %535 = vsyncmov [#allocation3 + $0x4] }
 0x26d   :  { %s536_s7 = vpop.sfrf %535 }
 0x26e   :  { %p658_p11 = scmp.ne.s32.totalorder %s536_s7, 0 }
 0x270   :  { %540 = shalt.err (%p658_p11)  }
 0x271   :  { %542 = vsyncmov [#allocation3 + $0x5] }
 0x274   :  { %s543_s11 = vpop.sfrf %542 }
 0x275   :  { %p659_p12 = scmp.ne.s32.totalorder %s543_s11, 0 }
 0x277   :  { %547 = shalt.err (%p659_p12)  }
 0x278   :  { %549 = vsyncmov [#allocation3 + $0x6] }
 0x27b   :  { %s550_s27 = vpop.sfrf %549 }
 0x27c   :  { %p660_p13 = scmp.ne.s32.totalorder %s550_s27, 0 }
 0x27e   :  { %554 = shalt.err (%p660_p13)  }
 0x27f   :  { %556 = vsyncmov [#allocation3 + $0x7] }
 0x282   :  { %s557_s28 = vpop.sfrf %556 }
 0x283   :  { %p661_p0 = scmp.ne.s32.totalorder %s557_s28, 0 }
 0x285   :  { %561 = shalt.err (%p661_p0)  }

</bundles_post_ra>
